<compile_context>
chip_gen: v7x
topology: tpu7x:2x2x1
jax: 0.10.0
libtpu: 0.0.40
codegen_flags: <defaults>
</compile_context>

<pallas_src>
import functools

import jax
import jax.numpy as jnp
from jax import lax
from jax.experimental import pallas as pl
from jax.experimental.pallas import tpu as pltpu


def _round_up(x, m):
    return (x + m - 1) // m * m


# ----------------------------- Pallas kernels ------------------------------


def _conv_stats_kernel(x_ref, w_ref, y_ref, psum_ref, psq_ref, *,
                       tile_rows, valid_rows, padded_rows, kh):
    """One (image, row-tile) step: KH lane-dense matmuls + per-tile BN partials.

    x_ref : (tile_rows + KH - 1, k_pad)   bf16  halo'd input rows
    w_ref : (KH, k_pad, W*Cout)           bf16  dw-folded block-diagonal weights
    y_ref : (tile_rows, W*Cout)           bf16  conv output rows
    psum_ref / psq_ref : (1, W*Cout)      f32   per-(image, row-tile) BN partials
    """
    # KH shifted row slabs x one folded weight slab each; f32 MXU accumulation.
    acc = jnp.dot(x_ref[pl.ds(0, tile_rows), :], w_ref[0],
                  preferred_element_type=jnp.float32)
    for dh in range(1, kh):
        acc = acc + jnp.dot(x_ref[pl.ds(dh, tile_rows), :], w_ref[dh],
                            preferred_element_type=jnp.float32)

    # BN batch-stat partials; mask rows that only exist because H was padded up.
    if valid_rows == padded_rows:
        ym = acc
    else:
        rt = pl.program_id(1)
        row_ids = (lax.broadcasted_iota(jnp.int32, (tile_rows, 1), 0)
                   + rt * tile_rows)
        ym = jnp.where(row_ids < valid_rows, acc, 0.0)
    psum_ref[...] = jnp.sum(ym, axis=0, keepdims=True)
    psq_ref[...] = jnp.sum(ym * ym, axis=0, keepdims=True)

    y_ref[...] = acc.astype(y_ref.dtype)


def _bn_relu_kernel(y_ref, scale_ref, shift_ref, o_ref):
    # BN folded into per-lane scale/shift; fused ReLU; bf16 in/out, f32 math.
    yv = y_ref[...].astype(jnp.float32)
    o_ref[...] = jnp.maximum(yv * scale_ref[...] + shift_ref[...],
                             0.0).astype(o_ref.dtype)


# ------------------------------ host wrapper -------------------------------


@functools.partial(jax.jit, static_argnames=("eps", "max_tile_rows"))
def conv_block_forward(x_nchw, w_oihw, gamma, beta, *, eps=1e-5, max_tile_rows=256):
    """ConvBlock forward. Input NCHW (PyTorch convention); returns NCHW f32."""
    N, Cin, H, W = x_nchw.shape
    Cout, Cin_w, KH, KW = w_oihw.shape
    assert Cin_w == Cin
    assert KH % 2 == 1 and KW % 2 == 1, "expects odd kernel ('same' padding), stride 1"
    pad_h, pad_w = KH // 2, KW // 2

    wp = W + 2 * pad_w
    w_cout = W * Cout
    k_raw = wp * Cin
    k_pad = _round_up(k_raw, 128)          # lane-aligned K for DMA + MXU

    # Row tiling (bf16 packs 2 rows/sublane -> keep tiles a multiple of 16 rows).
    th = min(_round_up(H, 16), _round_up(max_tile_rows, 16))
    h_out_pad = _round_up(H, th)
    num_row_tiles = h_out_pad // th
    halo_rows = th + KH - 1
    rows_in = h_out_pad + 2 * pad_h

    # ---- host-side layout (fused by XLA with the NCHW->NHWC transpose/pad) ----
    x = jnp.transpose(x_nchw, (0, 2, 3, 1)).astype(jnp.bfloat16)      # NHWC bf16
    x = jnp.pad(x, ((0, 0), (pad_h, pad_h + h_out_pad - H), (pad_w, pad_w), (0, 0)))
    x_rows = x.reshape(N, rows_in, k_raw)
    x_rows = jnp.pad(x_rows, ((0, 0), (0, 0), (0, k_pad - k_raw)))
    # Duplicate the (KH-1)-row halo per row tile so every grid step is a plain
    # rectangular block and BlockSpec auto-pipelining overlaps all the DMAs.
    row_idx = (jnp.arange(num_row_tiles)[:, None] * th
               + jnp.arange(halo_rows)[None, :])
    x_halo = x_rows[:, row_idx]            # (N, num_row_tiles, halo_rows, k_pad)

    # dw-folded block-diagonal weights:
    #   w_slab[kh][(w+dw)*Cin + ci, w*Cout + co] = w_oihw[co, ci, kh, dw]
    wt = jnp.transpose(w_oihw, (2, 3, 1, 0)).astype(jnp.float32)      # (KH,KW,Cin,Cout)
    shift = (jnp.arange(wp)[None, :, None]
             == (jnp.arange(W)[None, None, :] + jnp.arange(KW)[:, None, None])
             ).astype(jnp.float32)                                    # (KW, wp, W)
    w_slab = jnp.einsum("daw,hdio->haiwo", shift, wt).reshape(KH, k_raw, w_cout)
    w_slab = jnp.pad(w_slab, ((0, 0), (0, k_pad - k_raw), (0, 0))).astype(jnp.bfloat16)

    kernel1 = functools.partial(
        _conv_stats_kernel, tile_rows=th, valid_rows=H,
        padded_rows=h_out_pad, kh=KH)

    flops = 2 * N * num_row_tiles * KH * th * k_pad * w_cout
    bytes_accessed = (x_halo.size * 2 + w_slab.size * 2
                      + N * h_out_pad * w_cout * 2
                      + 2 * N * num_row_tiles * w_cout * 4)

    # ---- kernel 1: conv (3 lane-dense matmuls per row tile) + BN partials ----
    y, psum, psq = pl.pallas_call(
        kernel1,
        out_shape=(
            jax.ShapeDtypeStruct((N, h_out_pad, w_cout), jnp.bfloat16),
            jax.ShapeDtypeStruct((N, num_row_tiles, 1, w_cout), jnp.float32),
            jax.ShapeDtypeStruct((N, num_row_tiles, 1, w_cout), jnp.float32),
        ),
        grid=(N, num_row_tiles),
        in_specs=[
            pl.BlockSpec((None, None, halo_rows, k_pad), lambda n, rt: (n, rt, 0, 0)),
            pl.BlockSpec((KH, k_pad, w_cout), lambda n, rt: (0, 0, 0)),
        ],
        out_specs=(
            pl.BlockSpec((None, th, w_cout), lambda n, rt: (n, rt, 0)),
            pl.BlockSpec((None, None, 1, w_cout), lambda n, rt: (n, rt, 0, 0)),
            pl.BlockSpec((None, None, 1, w_cout), lambda n, rt: (n, rt, 0, 0)),
        ),
        compiler_params=pltpu.CompilerParams(
            dimension_semantics=("parallel", "parallel"),
            vmem_limit_bytes=48 << 20),
        cost_estimate=pl.CostEstimate(flops=flops, transcendentals=0,
                                      bytes_accessed=bytes_accessed),
    )(x_halo, w_slab)

    # ---- tiny f32 glue: reduce per-tile partials -> folded BN scale/shift ----
    cnt = float(N * H * W)
    sum_c = jnp.sum(psum.reshape(-1, W, Cout), axis=(0, 1))
    sq_c = jnp.sum(psq.reshape(-1, W, Cout), axis=(0, 1))
    mean = sum_c / cnt
    var = jnp.maximum(sq_c / cnt - mean * mean, 0.0)   # guard cancellation
    inv_std = lax.rsqrt(var + eps)
    scale_c = gamma.astype(jnp.float32) * inv_std
    shift_c = beta.astype(jnp.float32) - mean * scale_c
    scale2 = jnp.tile(scale_c, W)[None, :]             # (1, W*Cout), lane = w*Cout+co
    shift2 = jnp.tile(shift_c, W)[None, :]

    # ---- kernel 2: fused BN scale/shift + ReLU, row-tiled, aliased onto y ----
    out_flat = pl.pallas_call(
        _bn_relu_kernel,
        out_shape=jax.ShapeDtypeStruct((N, h_out_pad, w_cout), jnp.bfloat16),
        grid=(N, num_row_tiles),
        in_specs=[
            pl.BlockSpec((None, th, w_cout), lambda n, rt: (n, rt, 0)),
            pl.BlockSpec((1, w_cout), lambda n, rt: (0, 0)),
            pl.BlockSpec((1, w_cout), lambda n, rt: (0, 0)),
        ],
        out_specs=pl.BlockSpec((None, th, w_cout), lambda n, rt: (n, rt, 0)),
        input_output_aliases={0: 0},
        compiler_params=pltpu.CompilerParams(
            dimension_semantics=("parallel", "parallel")),
    )(y, scale2, shift2)

    out = out_flat.reshape(N, h_out_pad, W, Cout)[:, :H]
    return jnp.transpose(out, (0, 3, 1, 2)).astype(jnp.float32)


# --------------------------- pure-JAX reference ----------------------------


def conv_block_reference(x_nchw, w_oihw, gamma, beta, eps=1e-5):
    y = lax.conv_general_dilated(
        x_nchw, w_oihw, window_strides=(1, 1), padding=((1, 1), (1, 1)),
        dimension_numbers=("NCHW", "OIHW", "NCHW"))
    mean = jnp.mean(y, axis=(0, 2, 3), keepdims=True)
    var = jnp.mean((y - mean) ** 2, axis=(0, 2, 3), keepdims=True)  # biased
    yn = (y - mean) / jnp.sqrt(var + eps)
    yn = yn * gamma.reshape(1, -1, 1, 1) + beta.reshape(1, -1, 1, 1)
    return jnp.maximum(yn, 0.0)


# ---------------------------------- main -----------------------------------

if __name__ == "__main__":
    key = jax.random.PRNGKey(0)
    kx, kw_ = jax.random.split(key)

    N, Cin, H, W = 2, 4, 16, 16
    Cout = 8

    x = jax.random.normal(kx, (N, Cin, H, W), dtype=jnp.float32)
    w = jax.random.normal(kw_, (Cout, Cin, 3, 3), dtype=jnp.float32) * 0.1
    # BatchNorm2d default affine init: weight=1, bias=0
    gamma = jnp.ones((Cout,), dtype=jnp.float32)
    beta = jnp.zeros((Cout,), dtype=jnp.float32)

    out = conv_block_forward(x, w, gamma, beta)
    out = jax.block_until_ready(out)

    ref = conv_block_reference(x, w, gamma, beta)
    assert out.shape == (N, Cout, H, W)
    err = float(jnp.max(jnp.abs(out - ref)))
    # Activations, weights and the conv output y all stream as bf16 (f32 MXU
    # accumulation and BN math), so compare with a bf16-appropriate tolerance.
    assert err < 7.5e-2, f"mismatch vs reference: max abs err = {err}"

    print("KERNEL_OK")
</pallas_src>

<mosaic_0001>
module attributes {stable_mosaic.version = 11 : i64} {
  func.func @_conv_stats_kernel(%arg0: i32, %arg1: i32, %arg2: memref<1x1x18x128xbf16, #tpu.memory_space<vmem>>, %arg3: memref<3x128x128xbf16, #tpu.memory_space<vmem>>, %arg4: memref<1x16x128xbf16, #tpu.memory_space<vmem>>, %arg5: memref<1x1x1x128xf32, #tpu.memory_space<vmem>>, %arg6: memref<1x1x1x128xf32, #tpu.memory_space<vmem>>) attributes {dimension_semantics = [#tpu.dimension_semantics<parallel>, #tpu.dimension_semantics<parallel>], iteration_bounds = array<i64: 2, 1>, scalar_prefetch = 0 : i64, scratch_operands = 0 : i64, tpu.core_type = #tpu.core_type<tc>, window_params = [{transform_indices = @transform_0, window_bounds = array<i64: 1, 1, 18, 128>}, {pipeline_mode = #tpu.pipeline_mode<synchronous>, transform_indices = @transform_1, window_bounds = array<i64: 3, 128, 128>}, {transform_indices = @transform_2, window_bounds = array<i64: 1, 16, 128>}, {transform_indices = @transform_3, window_bounds = array<i64: 1, 1, 1, 128>}, {transform_indices = @transform_4, window_bounds = array<i64: 1, 1, 1, 128>}]} {
    %c0 = arith.constant 0 : index
    %c0_0 = arith.constant 0 : index
    %c0_1 = arith.constant 0 : index
    %c0_2 = arith.constant 0 : index
    %0 = vector.load %arg2[%c0, %c0_0, %c0_1, %c0_2] : memref<1x1x18x128xbf16, #tpu.memory_space<vmem>>, vector<1x1x16x128xbf16>
    %1 = vector.shape_cast %0 : vector<1x1x16x128xbf16> to vector<16x128xbf16>
    %c0_3 = arith.constant 0 : index
    %c0_4 = arith.constant 0 : index
    %c0_5 = arith.constant 0 : index
    %2 = vector.load %arg3[%c0_3, %c0_4, %c0_5] : memref<3x128x128xbf16, #tpu.memory_space<vmem>>, vector<1x128x128xbf16>
    %3 = vector.shape_cast %2 : vector<1x128x128xbf16> to vector<128x128xbf16>
    %cst = arith.constant dense<0.000000e+00> : vector<16x128xf32>
    %4 = tpu.matmul %1, %3, %cst {dimension_numbers = #tpu.dot_dimension_numbers<[1], [0], [0], [1], [0, 0, 1, 1], [], []>} : vector<16x128xbf16>, vector<128x128xbf16>, vector<16x128xf32> -> vector<16x128xf32>
    %c0_6 = arith.constant 0 : index
    %c0_7 = arith.constant 0 : index
    %c1 = arith.constant 1 : index
    %c0_8 = arith.constant 0 : index
    %5 = vector.load %arg2[%c0_6, %c0_7, %c1, %c0_8] : memref<1x1x18x128xbf16, #tpu.memory_space<vmem>>, vector<1x1x16x128xbf16>
    %6 = vector.shape_cast %5 : vector<1x1x16x128xbf16> to vector<16x128xbf16>
    %c1_9 = arith.constant 1 : index
    %c0_10 = arith.constant 0 : index
    %c0_11 = arith.constant 0 : index
    %7 = vector.load %arg3[%c1_9, %c0_10, %c0_11] : memref<3x128x128xbf16, #tpu.memory_space<vmem>>, vector<1x128x128xbf16>
    %8 = vector.shape_cast %7 : vector<1x128x128xbf16> to vector<128x128xbf16>
    %cst_12 = arith.constant dense<0.000000e+00> : vector<16x128xf32>
    %9 = tpu.matmul %6, %8, %cst_12 {dimension_numbers = #tpu.dot_dimension_numbers<[1], [0], [0], [1], [0, 0, 1, 1], [], []>} : vector<16x128xbf16>, vector<128x128xbf16>, vector<16x128xf32> -> vector<16x128xf32>
    %10 = arith.addf %4, %9 : vector<16x128xf32>
    %c0_13 = arith.constant 0 : index
    %c0_14 = arith.constant 0 : index
    %c2 = arith.constant 2 : index
    %c0_15 = arith.constant 0 : index
    %11 = vector.load %arg2[%c0_13, %c0_14, %c2, %c0_15] : memref<1x1x18x128xbf16, #tpu.memory_space<vmem>>, vector<1x1x16x128xbf16>
    %12 = vector.shape_cast %11 : vector<1x1x16x128xbf16> to vector<16x128xbf16>
    %c2_16 = arith.constant 2 : index
    %c0_17 = arith.constant 0 : index
    %c0_18 = arith.constant 0 : index
    %13 = vector.load %arg3[%c2_16, %c0_17, %c0_18] : memref<3x128x128xbf16, #tpu.memory_space<vmem>>, vector<1x128x128xbf16>
    %14 = vector.shape_cast %13 : vector<1x128x128xbf16> to vector<128x128xbf16>
    %cst_19 = arith.constant dense<0.000000e+00> : vector<16x128xf32>
    %15 = tpu.matmul %12, %14, %cst_19 {dimension_numbers = #tpu.dot_dimension_numbers<[1], [0], [0], [1], [0, 0, 1, 1], [], []>} : vector<16x128xbf16>, vector<128x128xbf16>, vector<16x128xf32> -> vector<16x128xf32>
    %16 = arith.addf %10, %15 : vector<16x128xf32>
    %cst_20 = arith.constant dense<0.000000e+00> : vector<128xf32>
    %17 = vector.multi_reduction <add>, %16, %cst_20 [0] : vector<16x128xf32> to vector<128xf32>
    %18 = vector.shape_cast %17 : vector<128xf32> to vector<1x128xf32>
    %c0_21 = arith.constant 0 : index
    %c0_22 = arith.constant 0 : index
    %c0_23 = arith.constant 0 : index
    %c0_24 = arith.constant 0 : index
    %19 = vector.load %arg5[%c0_21, %c0_22, %c0_23, %c0_24] : memref<1x1x1x128xf32, #tpu.memory_space<vmem>>, vector<1x1x1x128xf32>
    %20 = vector.shape_cast %19 : vector<1x1x1x128xf32> to vector<1x128xf32>
    %21 = vector.shape_cast %18 : vector<1x128xf32> to vector<1x1x1x128xf32>
    tpu.vector_store %arg5[%c0_21, %c0_22, %c0_23, %c0_24], %21 {strides = array<i32>} : memref<1x1x1x128xf32, #tpu.memory_space<vmem>>, vector<1x1x1x128xf32>,
    %22 = arith.mulf %16, %16 : vector<16x128xf32>
    %cst_25 = arith.constant dense<0.000000e+00> : vector<128xf32>
    %23 = vector.multi_reduction <add>, %22, %cst_25 [0] : vector<16x128xf32> to vector<128xf32>
    %24 = vector.shape_cast %23 : vector<128xf32> to vector<1x128xf32>
    %c0_26 = arith.constant 0 : index
    %c0_27 = arith.constant 0 : index
    %c0_28 = arith.constant 0 : index
    %c0_29 = arith.constant 0 : index
    %25 = vector.load %arg6[%c0_26, %c0_27, %c0_28, %c0_29] : memref<1x1x1x128xf32, #tpu.memory_space<vmem>>, vector<1x1x1x128xf32>
    %26 = vector.shape_cast %25 : vector<1x1x1x128xf32> to vector<1x128xf32>
    %27 = vector.shape_cast %24 : vector<1x128xf32> to vector<1x1x1x128xf32>
    tpu.vector_store %arg6[%c0_26, %c0_27, %c0_28, %c0_29], %27 {strides = array<i32>} : memref<1x1x1x128xf32, #tpu.memory_space<vmem>>, vector<1x1x1x128xf32>,
    %28 = arith.truncf %16 : vector<16x128xf32> to vector<16x128xbf16>
    %c0_30 = arith.constant 0 : index
    %c0_31 = arith.constant 0 : index
    %c0_32 = arith.constant 0 : index
    %29 = vector.load %arg4[%c0_30, %c0_31, %c0_32] : memref<1x16x128xbf16, #tpu.memory_space<vmem>>, vector<1x16x128xbf16>
    %30 = vector.shape_cast %29 : vector<1x16x128xbf16> to vector<16x128xbf16>
    %31 = vector.shape_cast %28 : vector<16x128xbf16> to vector<1x16x128xbf16>
    tpu.vector_store %arg4[%c0_30, %c0_31, %c0_32], %31 {strides = array<i32>} : memref<1x16x128xbf16, #tpu.memory_space<vmem>>, vector<1x16x128xbf16>,
    return
  }
  func.func @transform_0(%arg0: i32, %arg1: i32) -> (i32, i32, i32, i32) {
    %c0_i32 = arith.constant 0 : i32
    %c0_i32_0 = arith.constant 0 : i32
    %c0_i32_1 = arith.constant 0 : i32
    return %arg0, %arg1, %c0_i32, %c0_i32_0 : i32, i32, i32, i32
  }
  func.func @transform_1(%arg0: i32, %arg1: i32) -> (i32, i32, i32) {
    %c0_i32 = arith.constant 0 : i32
    %c0_i32_0 = arith.constant 0 : i32
    %c0_i32_1 = arith.constant 0 : i32
    %c0_i32_2 = arith.constant 0 : i32
    return %c0_i32, %c0_i32_0, %c0_i32_1 : i32, i32, i32
  }
  func.func @transform_2(%arg0: i32, %arg1: i32) -> (i32, i32, i32) {
    %c0_i32 = arith.constant 0 : i32
    %c0_i32_0 = arith.constant 0 : i32
    return %arg0, %arg1, %c0_i32 : i32, i32, i32
  }
  func.func @transform_3(%arg0: i32, %arg1: i32) -> (i32, i32, i32, i32) {
    %c0_i32 = arith.constant 0 : i32
    %c0_i32_0 = arith.constant 0 : i32
    %c0_i32_1 = arith.constant 0 : i32
    return %arg0, %arg1, %c0_i32, %c0_i32_0 : i32, i32, i32, i32
  }
  func.func @transform_4(%arg0: i32, %arg1: i32) -> (i32, i32, i32, i32) {
    %c0_i32 = arith.constant 0 : i32
    %c0_i32_0 = arith.constant 0 : i32
    %c0_i32_1 = arith.constant 0 : i32
    return %arg0, %arg1, %c0_i32, %c0_i32_0 : i32, i32, i32, i32
  }
}

module attributes {stable_mosaic.version = 11 : i64} {
  func.func @_bn_relu_kernel(%arg0: i32, %arg1: i32, %arg2: memref<1x16x128xbf16, #tpu.memory_space<vmem>>, %arg3: memref<1x128xf32, #tpu.memory_space<vmem>>, %arg4: memref<1x128xf32, #tpu.memory_space<vmem>>, %arg5: memref<1x16x128xbf16, #tpu.memory_space<vmem>>) attributes {dimension_semantics = [#tpu.dimension_semantics<parallel>, #tpu.dimension_semantics<parallel>], iteration_bounds = array<i64: 2, 1>, scalar_prefetch = 0 : i64, scratch_operands = 0 : i64, tpu.core_type = #tpu.core_type<tc>, window_params = [{transform_indices = @transform_0, window_bounds = array<i64: 1, 16, 128>}, {pipeline_mode = #tpu.pipeline_mode<synchronous>, transform_indices = @transform_1, window_bounds = array<i64: 1, 128>}, {pipeline_mode = #tpu.pipeline_mode<synchronous>, transform_indices = @transform_2, window_bounds = array<i64: 1, 128>}, {transform_indices = @transform_3, window_bounds = array<i64: 1, 16, 128>}]} {
    %c0 = arith.constant 0 : index
    %c0_0 = arith.constant 0 : index
    %c0_1 = arith.constant 0 : index
    %0 = vector.load %arg2[%c0, %c0_0, %c0_1] : memref<1x16x128xbf16, #tpu.memory_space<vmem>>, vector<1x16x128xbf16>
    %1 = vector.shape_cast %0 : vector<1x16x128xbf16> to vector<16x128xbf16>
    %2 = arith.extf %1 : vector<16x128xbf16> to vector<16x128xf32>
    %c0_2 = arith.constant 0 : index
    %c0_3 = arith.constant 0 : index
    %3 = vector.load %arg3[%c0_2, %c0_3] : memref<1x128xf32, #tpu.memory_space<vmem>>, vector<1x128xf32>
    %4 = vector.broadcast %3 : vector<1x128xf32> to vector<16x128xf32>
    %5 = arith.mulf %2, %4 : vector<16x128xf32>
    %c0_4 = arith.constant 0 : index
    %c0_5 = arith.constant 0 : index
    %6 = vector.load %arg4[%c0_4, %c0_5] : memref<1x128xf32, #tpu.memory_space<vmem>>, vector<1x128xf32>
    %7 = vector.broadcast %6 : vector<1x128xf32> to vector<16x128xf32>
    %8 = arith.addf %5, %7 : vector<16x128xf32>
    %cst = arith.constant 0.000000e+00 : f32
    %9 = vector.broadcast %cst : f32 to vector<16x128xf32>
    %10 = arith.maximumf %8, %9 : vector<16x128xf32>
    %11 = arith.truncf %10 : vector<16x128xf32> to vector<16x128xbf16>
    %c0_6 = arith.constant 0 : index
    %c0_7 = arith.constant 0 : index
    %c0_8 = arith.constant 0 : index
    %12 = vector.load %arg5[%c0_6, %c0_7, %c0_8] : memref<1x16x128xbf16, #tpu.memory_space<vmem>>, vector<1x16x128xbf16>
    %13 = vector.shape_cast %12 : vector<1x16x128xbf16> to vector<16x128xbf16>
    %14 = vector.shape_cast %11 : vector<16x128xbf16> to vector<1x16x128xbf16>
    tpu.vector_store %arg5[%c0_6, %c0_7, %c0_8], %14 {strides = array<i32>} : memref<1x16x128xbf16, #tpu.memory_space<vmem>>, vector<1x16x128xbf16>,
    return
  }
  func.func @transform_0(%arg0: i32, %arg1: i32) -> (i32, i32, i32) {
    %c0_i32 = arith.constant 0 : i32
    %c0_i32_0 = arith.constant 0 : i32
    return %arg0, %arg1, %c0_i32 : i32, i32, i32
  }
  func.func @transform_1(%arg0: i32, %arg1: i32) -> (i32, i32) {
    %c0_i32 = arith.constant 0 : i32
    %c0_i32_0 = arith.constant 0 : i32
    %c0_i32_1 = arith.constant 0 : i32
    return %c0_i32, %c0_i32_0 : i32, i32
  }
  func.func @transform_2(%arg0: i32, %arg1: i32) -> (i32, i32) {
    %c0_i32 = arith.constant 0 : i32
    %c0_i32_0 = arith.constant 0 : i32
    %c0_i32_1 = arith.constant 0 : i32
    return %c0_i32, %c0_i32_0 : i32, i32
  }
  func.func @transform_3(%arg0: i32, %arg1: i32) -> (i32, i32, i32) {
    %c0_i32 = arith.constant 0 : i32
    %c0_i32_0 = arith.constant 0 : i32
    return %arg0, %arg1, %c0_i32 : i32, i32, i32
  }
}

</mosaic_0001>

<bundles_post_ra>
// kernel: tile.13
= control target key start
LH: loop header
LB: loop body
LE: loop exit
PB: predicated region body
PF: predicated region fallthrough
CT: control target
= control target key end

     0   :  { %s28_s0 = inlined_call_operand.vmem [shape: f32[8], index: 0, kind: input, shape index: {}]   ;;  %s29_s1 = inlined_call_operand.vmem [shape: f32[16,8], index: 1, kind: output, shape index: {}]  }
   0x1   :  { %v4_v0 = vld [vmem:[%s28_s0] ss:$0 sm:$0xff] }
   0x2   :  { %5 = vst [vmem:[%s29_s1] sm:$0xff] %v4_v0  ;;  %8 = vst [vmem:[%s29_s1 + $0x8] sm:$0xff] %v4_v0 }

// kernel: tile.14
= control target key start
LH: loop header
LB: loop body
LE: loop exit
PB: predicated region body
PF: predicated region fallthrough
CT: control target
= control target key end

     0   :  { %s131_s10 = smov 120   ;;  %s132_s11 = smov 104   ;;  %vm3_vm0 = vcmask 64512   ;;  %vm9_vm1 = vcmask 1048512   ;;  %vm15_vm2 = vcmask 982912   ;;  %vm21_vm3 = vcmask 917312   ;;  %s207_s0 = inlined_call_operand.vmem [shape: f32[16,8], index: 0, kind: input, shape index: {}]   ;;  %s208_s1 = inlined_call_operand.vmem [shape: f32[1,128], index: 1, kind: output, shape index: {}]  }
   0x1   :  { %v101_v0 = vld [vmem:[%s207_s0 + $0xf] sm:$0x1]   ;;  %v103_v1 = vld [vmem:[%s207_s0 + $0xd] sm:$0x1]   ;;  %v102_v2 = vld [vmem:[%s207_s0 + $0xe] sm:$0x1]  }
   0x2   :  { %7 = vrot.lane.b32.xlu0 %v101_v0, %s131_s10  ;;  %19 = vrot.lane.b32.xlu1 %v103_v1, %s132_s11  ;;  %v104_v3 = vld [vmem:[%s207_s0 + $0xc] sm:$0x1]   ;;  %s133_s16 = smov 112   ;;  %s134_s17 = smov 96   ;;  %v105_v4 = vld [vmem:[%s207_s0 + $0xb] sm:$0x1]  }
   0x3   :  { %v106_v5 = vld [vmem:[%s207_s0 + $0xa] sm:$0x1]   ;;  %v2_v6 = vld [vmem:[%s207_s0] sm:$0x1]   ;;  %s135_s24 = smov 88   ;;  %s136_s25 = smov 80  }
   0x4   :  { %4 = vst.msk [vmem:[#allocation0] sm:$0x1] %vm3_vm0, %v2_v6   ;;  %v107_v7 = vld [vmem:[%s207_s0 + $0x9] sm:$0x1]   ;;  %v108_v8 = vld [vmem:[%s207_s0 + $0x8] sm:$0x1]  }
   0x5   :  { %s137_s30 = smov 72   ;;  %s138_s2 = smov 64   ;;  %v109_v9 = vld [vmem:[%s207_s0 + $0x7] sm:$0x1]   ;;  %v110_v10 = vld [vmem:[%s207_s0 + $0x6] sm:$0x1]  }
   0x6   :  { %13 = vrot.lane.b32.xlu0 %v102_v2, %s133_s16  ;;  %25 = vrot.lane.b32.xlu1 %v104_v3, %s134_s17  ;;  %s139_s7 = smov 56   ;;  %s140_s8 = smov 48   ;;  %v111_v11 = vld [vmem:[%s207_s0 + $0x5] sm:$0x1]   ;;  %v112_v12 = vld [vmem:[%s207_s0 + $0x4] sm:$0x1]  }
   0x7   :  { %s141_s13 = smov 40   ;;  %s142_s14 = smov 32   ;;  %v113_v13 = vld [vmem:[%s207_s0 + $0x3] sm:$0x1]   ;;  %v114_v14 = vld [vmem:[%s207_s0 + $0x2] sm:$0x1]  }
   0x8   :  { %s143_s19 = smov 24   ;;  %s144_s20 = smov 16   ;;  %v115_v15 = vld [vmem:[%s207_s0 + $0x1] sm:$0x1]   ;;  %vm27_vm4 = vcmask 851712   ;;  %vm33_vm5 = vcmask 786112  }
   0x9   :  { %s145_s0 = smov 8   ;;  %vm39_vm6 = vcmask 720512   ;;  %vm45_vm7 = vcmask 654912   ;;  %vm51_vm8 = vcmask 589312   ;;  %vm57_vm9 = vcmask 523712  }
   0xa   :  { %31 = vrot.lane.b32.xlu0 %v105_v4, %s135_s24  ;;  %37 = vrot.lane.b32.xlu1 %v106_v5, %s136_s25  ;;  %vm63_vm10 = vcmask 458112   ;;  %vm69_vm11 = vcmask 392512   ;;  %vm75_vm12 = vcmask 326912   ;;  %vm81_vm13 = vcmask 261312  }
   0xb   :  { %vm87_vm14 = vcmask 195712   ;;  %vm93_vm15 = vcmask 130112  }
   0xe   :  { %43 = vrot.lane.b32.xlu0 %v107_v7, %s137_s30  ;;  %49 = vrot.lane.b32.xlu1 %v108_v8, %s138_s2 }
  0x12   :  { %55 = vrot.lane.b32.xlu0 %v109_v9, %s139_s7  ;;  %61 = vrot.lane.b32.xlu1 %v110_v10, %s140_s8 }
  0x16   :  { %67 = vrot.lane.b32.xlu0 %v111_v11, %s141_s13  ;;  %73 = vrot.lane.b32.xlu1 %v112_v12, %s142_s14 }
  0x1a   :  { %79 = vrot.lane.b32.xlu0 %v113_v13, %s143_s19  ;;  %85 = vrot.lane.b32.xlu1 %v114_v14, %s144_s20 }
  0x1e   :  { %91 = vrot.lane.b32.xlu0 %v115_v15, %s145_s0 }
  0x74   :  { %v8_v16 = vpop.permute.xlu0 %7   ;;  %v20_v17 = vpop.permute.xlu1 %19  }
  0x75   :  { %10 = vst.msk [vmem:[#allocation0] sm:$0x1] %vm9_vm1, %v8_v16  }
  0x78   :  { %v14_v18 = vpop.permute.xlu0 %13   ;;  %v26_v19 = vpop.permute.xlu1 %25  }
  0x79   :  { %16 = vst.msk [vmem:[#allocation0] sm:$0x1] %vm15_vm2, %v14_v18  }
  0x7a   :  { %22 = vst.msk [vmem:[#allocation0] sm:$0x1] %vm21_vm3, %v20_v17  }
  0x7b   :  { %28 = vst.msk [vmem:[#allocation0] sm:$0x1] %vm27_vm4, %v26_v19  }
  0x7c   :  { %v32_v20 = vpop.permute.xlu0 %31   ;;  %v38_v21 = vpop.permute.xlu1 %37  }
  0x7d   :  { %34 = vst.msk [vmem:[#allocation0] sm:$0x1] %vm33_vm5, %v32_v20  }
  0x7e   :  { %40 = vst.msk [vmem:[#allocation0] sm:$0x1] %vm39_vm6, %v38_v21  }
  0x80   :  { %v44_v22 = vpop.permute.xlu0 %43   ;;  %v50_v23 = vpop.permute.xlu1 %49  }
  0x81   :  { %46 = vst.msk [vmem:[#allocation0] sm:$0x1] %vm45_vm7, %v44_v22  }
  0x82   :  { %52 = vst.msk [vmem:[#allocation0] sm:$0x1] %vm51_vm8, %v50_v23  }
  0x84   :  { %v56_v24 = vpop.permute.xlu0 %55   ;;  %v62_v25 = vpop.permute.xlu1 %61  }
  0x85   :  { %58 = vst.msk [vmem:[#allocation0] sm:$0x1] %vm57_vm9, %v56_v24  }
  0x86   :  { %64 = vst.msk [vmem:[#allocation0] sm:$0x1] %vm63_vm10, %v62_v25  }
  0x88   :  { %v68_v26 = vpop.permute.xlu0 %67   ;;  %v74_v27 = vpop.permute.xlu1 %73  }
  0x89   :  { %70 = vst.msk [vmem:[#allocation0] sm:$0x1] %vm69_vm11, %v68_v26  }
  0x8a   :  { %76 = vst.msk [vmem:[#allocation0] sm:$0x1] %vm75_vm12, %v74_v27  }
  0x8c   :  { %v80_v28 = vpop.permute.xlu0 %79   ;;  %v86_v29 = vpop.permute.xlu1 %85  }
  0x8d   :  { %82 = vst.msk [vmem:[#allocation0] sm:$0x1] %vm81_vm13, %v80_v28  }
  0x8e   :  { %88 = vst.msk [vmem:[#allocation0] sm:$0x1] %vm87_vm14, %v86_v29  }
  0x90   :  { %v92_v30 = vpop.permute.xlu0 %91  }
  0x91   :  { %94 = vst.msk [vmem:[#allocation0] sm:$0x1] %vm93_vm15, %v92_v30  }
  0x98   :  { %v98_v31 = vld [vmem:[#allocation0] sm:$0x1] }
  0x99   :  { %100 = vst [vmem:[%s208_s1] sm:$0x1] %v98_v31 }

// kernel: conv_block_forward.3
= control target key start
LH: loop header
LB: loop body
LE: loop exit
PB: predicated region body
PF: predicated region fallthrough
CT: control target
= control target key end

     0   :  { %s427_s12 = smov 0   ;;  %s429_s13 = smov 0   ;;  %s463_s0 = inlined_call_operand.vmem [shape: bf16[2,16,128], index: 0, kind: input, shape index: {}, may-alias: {0,3}]   ;;  %s464_s1 = inlined_call_operand.vmem [shape: f32[1,128], index: 1, kind: input, shape index: {}]   ;;  %s465_s2 = inlined_call_operand.vmem [shape: f32[1,128], index: 2, kind: input, shape index: {}]   ;;  %s466_s3 = inlined_call_operand.vmem [shape: bf16[2,16,128], index: 3, kind: output, shape index: {}, may-alias: {0,3}]  }
   0x1   :  { %s431_s14 = smov 0  }
   0x2 LB: > { %s25_s15 = sadd.s32 1, %s401_s13  ;;  %p335_p0 = scmp.ge.s32.totalorder %s405_s14, 1  ;;  %s405_s14 = sphi %s431_s14, %s13_s14   ;;  %s401_s13 = sphi %s429_s13, %s468_s13   ;;  %s397_s12 = sphi %s427_s12, %s467_s12  }
   0x3   : > { %p27_p1 = scmp.ge.s32.totalorder %s25_s15, 2  ;;  %p158_p2 = scmp.lt.s32.totalorder %s405_s14, 3 }
   0x5   : > { %s470_s15 = smov (%p27_p1, %s25_s15), 0  ;;  %p159_p3 = pnand %p335_p0, %p158_p2 }
   0x6   : > { %p191_p4 = scmp.lt.s32.totalorder (!%p159_p3), %s397_s12, 1  ;;  %v340_v1 = vld [vmem:[%s464_s1] ss:$0 sm:$0xff] (!%p159_p3) }
   0x7   : > { %162 = sbr.rel (%p159_p3) target bundleno = 29 (0x1d), region = 32  ;;  %v341_v4 = vld [vmem:[%s465_s2] ss:$0 sm:$0xff] (!%p159_p3) }
   0xe   : > { %s472_s12 = smov (!%p191_p4, %s397_s12), 1 }
   0xf   : > { %s346_s16 = sshll.u32 %s472_s12, 3 }
  0x10   : > { %s198_s19 = scalar_lea.vmem %s463_s0, %s346_s16  ;;  %s208_s26 = scalar_lea.vmem %s466_s3, %s346_s16 }
  0x11   : > { %v351_v0 = vld [vmem:[%s198_s19] sm:$0xff]  }
  0x12   : > { %v352_v2 = vunpack.c.l.bf16 %v351_v0  ;;  %v353_v3 = vunpack.c.h.bf16 %v351_v0 }
  0x14   : > { %v221_v5 = vmul.f32 %v352_v2, %v340_v1  ;;  %v222_v6 = vmul.f32 %v353_v3, %v340_v1 }
  0x16   : > { %v230_v7 = vadd.f32 %v341_v4, %v221_v5  ;;  %v231_v8 = vadd.f32 %v341_v4, %v222_v6 }
  0x18   : > { %v232_v9 = vmax.f32 %v230_v7, 0.0  ;;  %v233_v10 = vmax.f32 %v231_v8, 0.0 }
  0x1a   : > { %v357_v11 = vpack.c.bf16 %v233_v10, %v232_v9 }
  0x1c   : > { %358 = vst [vmem:[%s208_s26] sm:$0xff] %v357_v11  }
  0x1d PF: > { %s13_s14 = sadd.s32 1, %s405_s14   ;;  %s467_s12 = smov %s401_s13 }
  0x1e   : > { %p10_p5 = scmp.ge.s32.totalorder %s13_s14, 4   ;;  %s468_s13 = smov %s470_s15 }
  0x20   :  { %12 = sbr.rel (!%p10_p5) target bundleno = 2 (0x2), region = 62 }

// kernel: conv_block_forward.2
= control target key start
LH: loop header
LB: loop body
LE: loop exit
PB: predicated region body
PF: predicated region fallthrough
CT: control target
= control target key end

     0   :  { %s1088_s15 = smov 0   ;;  %s1090_s16 = smov 0   ;;  %s1241_s0 = inlined_call_operand.vmem [shape: bf16[2,1,18,128], index: 0, kind: input, shape index: {}]   ;;  %s1242_s1 = inlined_call_operand.vmem [shape: bf16[3,128,128], index: 1, kind: input, shape index: {}]   ;;  %s1243_s2 = inlined_call_operand.vmem [shape: bf16[2,16,128], index: 2, kind: output, shape index: {0}]   ;;  %s1244_s3 = inlined_call_operand.vmem [shape: f32[2,1,1,128], index: 3, kind: output, shape index: {1}]   ;;  %s1245_s4 = inlined_call_operand.vmem [shape: f32[2,1,1,128], index: 4, kind: output, shape index: {2}]  }
   0x1   :  { %s1092_s17 = smov 0  }
   0x2 LB: > { %s27_s18 = sadd.s32 1, %s1055_s16  ;;  %p815_p0 = scmp.ge.s32.totalorder %s1059_s17, 1  ;;  %s1059_s17 = sphi %s1092_s17, %s15_s17   ;;  %s1055_s16 = sphi %s1090_s16, %s1247_s16   ;;  %s1051_s15 = sphi %s1088_s15, %s1246_s15  }
   0x3   : > { %p29_p1 = scmp.ge.s32.totalorder %s27_s18, 2  ;;  %p191_p2 = scmp.lt.s32.totalorder %s1059_s17, 3 }
   0x5   : > { %s1249_s18 = smov (%p29_p1, %s27_s18), 0  ;;  %p192_p3 = pnand %p815_p0, %p191_p2 }
   0x6   : > { %v1010_v0 = vld [vmem:[%s1242_s1] sm:$0xff] (!%p192_p3)   ;;  %v1061_v1 = vmov (!%p192_p3), 0.0   ;;  %v1011_v2 = vld [vmem:[%s1242_s1 + $0x8] sm:$0xff] (!%p192_p3)   ;;  %vm1062_vm0 = vmmov (!%p192_p3), 0   ;;  %p237_p4 = scmp.lt.s32.totalorder (!%p192_p3), %s1051_s15, 1  ;;  %v1012_v3 = vld [vmem:[%s1242_s1 + $0x10] sm:$0xff] (!%p192_p3)  }
   0x7   : > { %195 = sbr.rel (%p192_p3) target bundleno = 304 (0x130), region = 28  ;;  %937 = vmatprep.subr.bf16.mxu0 (!%p192_p3), %v1061_v1  ;;  %917 = vmatprep.subr.bf16.mxu1 (!%p192_p3), %v1061_v1  ;;  %v1018_v4 = vld [vmem:[%s1242_s1 + $0x40] sm:$0xff] (!%p192_p3)   ;;  %v1013_v5 = vld [vmem:[%s1242_s1 + $0x18] sm:$0xff] (!%p192_p3)   ;;  %v1022_v6 = vld [vmem:[%s1242_s1 + $0x48] sm:$0xff] (!%p192_p3)   ;;  %vm313_vm1 = vsmask.f32 (!%p192_p3), 7424 }
   0x8   : > { %938 = vmatpush3.bf16.msra.mxu0 (!%p192_p3), %v1010_v0  ;;  %953 = vmatprep.mubr.msk.bf16.mxu0 (!%p192_p3), %vm1062_vm0, %v1061_v1  ;;  %v1014_v7 = vld [vmem:[%s1242_s1 + $0x20] sm:$0xff] (!%p192_p3)   ;;  %v1024_v8 = vld [vmem:[%s1242_s1 + $0x50] sm:$0xff] (!%p192_p3)   ;;  %v1015_v9 = vld [vmem:[%s1242_s1 + $0x28] sm:$0xff] (!%p192_p3)   ;;  %vm527_vm2 = vcmask (!%p192_p3), 1046528  }
   0x9   : > { %939 = vmatprep.subr.bf16.mxu0 (!%p192_p3), %v1061_v1  ;;  %933 = vmatprep.mubr.msk.bf16.mxu1 (!%p192_p3), %vm1062_vm0, %v1061_v1  ;;  %v1026_v10 = vld [vmem:[%s1242_s1 + $0x58] sm:$0xff] (!%p192_p3)   ;;  %v1016_v11 = vld [vmem:[%s1242_s1 + $0x30] sm:$0xff] (!%p192_p3)   ;;  %v1028_v14 = vld [vmem:[%s1242_s1 + $0x60] sm:$0xff] (!%p192_p3)  }
   0xa   : > { %918 = vmatpush3.bf16.msra.mxu1 (!%p192_p3), %v1018_v4  ;;  %v1017_v16 = vld [vmem:[%s1242_s1 + $0x38] sm:$0xff] (!%p192_p3)   ;;  %v1030_v18 = vld [vmem:[%s1242_s1 + $0x68] sm:$0xff] (!%p192_p3)   ;;  %v1021_v20 = vld [vmem:[%s1242_s1 + $0x80] sm:$0xff] (!%p192_p3)  }
   0xb   : > { %919 = vmatprep.subr.bf16.mxu1 (!%p192_p3), %v1061_v1  ;;  %v1032_v21 = vld [vmem:[%s1242_s1 + $0x70] sm:$0xff] (!%p192_p3)   ;;  %v1023_v25 = vld [vmem:[%s1242_s1 + $0x88] sm:$0xff] (!%p192_p3)   ;;  %v1034_v26 = vld [vmem:[%s1242_s1 + $0x78] sm:$0xff] (!%p192_p3)  }
   0xc   : > { %940 = vmatpush3.bf16.msra.mxu0 (!%p192_p3), %v1011_v2  ;;  %v1025_v29 = vld [vmem:[%s1242_s1 + $0x90] sm:$0xff] (!%p192_p3)   ;;  %v1027_v31 = vld [vmem:[%s1242_s1 + $0x98] sm:$0xff] (!%p192_p3)   ;;  %v1029_v32 = vld [vmem:[%s1242_s1 + $0xa0] sm:$0xff] (!%p192_p3)  }
   0xd   : > { %941 = vmatprep.subr.bf16.mxu0 (!%p192_p3), %v1061_v1  ;;  %v1031_v33 = vld [vmem:[%s1242_s1 + $0xa8] sm:$0xff] (!%p192_p3)   ;;  %v1033_v36 = vld [vmem:[%s1242_s1 + $0xb0] sm:$0xff] (!%p192_p3)   ;;  %v1036_v38 = vld [vmem:[%s1242_s1 + $0xb8] sm:$0xff] (!%p192_p3)  }
   0xe   : > { %s1251_s15 = smov (!%p237_p4, %s1051_s15), 1  ;;  %920 = vmatpush3.bf16.msra.mxu1 %v1022_v6 }
   0xf   : > { %s983_s7 = smul.u32 12, %s1251_s15  ;;  %921 = vmatprep.subr.bf16.mxu1 %v1061_v1  ;;  %s267_s10 = scalar_lea.vmem %s1245_s4, %s1251_s15 }
  0x10   : > { %942 = vmatpush3.bf16.msra.mxu0 %v1012_v3 }
  0x11   : > { %943 = vmatprep.subr.bf16.mxu0 %v1061_v1  ;;  %s1151_s14 = scalar_lea.vmem %s1241_s0, %s983_s7  ;;  %s261_s7 = scalar_lea.vmem %s1244_s3, %s1251_s15 }
  0x12   : > { %922 = vmatpush3.bf16.msra.mxu1 %v1024_v8  ;;  %v269_v12 = vld [vmem:[%s1151_s14] sm:$0xf]  ;;  %v270_v13 = vld [vmem:[%s1151_s14 + $0x4] sm:$0xf] }
  0x13   : > { %923 = vmatprep.subr.bf16.mxu1 %v1061_v1  ;;  %v835_v15 = vcombine.low %v269_v12, %v270_v13  ;;  %v1035_v19 = vld [vmem:[%s1151_s14 + $0x8] ss:$0 sps:$4 sm:$0x11]   ;;  %v506_v34 = vld [vmem:[%s1151_s14] sm:$0xe]  ;;  %s882_s14 = sshll.u32 %s1251_s15, 3 }
  0x14   : > { %944 = vmatpush3.bf16.msra.mxu0 %v1013_v5  ;;  %v322_v24 = vshll.u32 %v1035_v19, 16  ;;  %v869_v35 = vcombine.low %v506_v34, %v270_v13  ;;  %v529_v39 = vrot.slane %v1035_v19, 1  ;;  %s254_s30 = scalar_lea.vmem %s1243_s2, %s882_s14 }
  0x15   : > { %945 = vmatprep.subr.bf16.mxu0 %v1061_v1  ;;  %v317_v17 = vshll.u32 %v835_v15, 16  ;;  %v315_v22 = vshrl.u32 %v835_v15, 16 }
  0x16   : > { %924 = vmatpush3.bf16.msra.mxu1 %v1026_v10  ;;  %v324_v28 = vrot.slane %v322_v24, 1  ;;  %v528_v37 = vrot.slane %v869_v35, 1 }
  0x17   : > { %925 = vmatprep.subr.bf16.mxu1 %v1061_v1  ;;  %v319_v23 = vrot.slane %v317_v17, 1 }
  0x18   : > { %946 = vmatpush3.bf16.msra.mxu0 %v1014_v7  ;;  %v530_v40 = vsel %vm527_vm2, %v528_v37, %v529_v39 }
  0x19   : > { %947 = vmatprep.subr.bf16.mxu0 %v1061_v1  ;;  %v320_v27 = vor.u32 %v319_v23, %v315_v22 }
  0x1a   : > { %926 = vmatpush3.bf16.msra.mxu1 %v1028_v14 }
  0x1b   : > { %927 = vmatprep.subr.bf16.mxu1 %v1061_v1  ;;  %v325_v30 = vsel %vm313_vm1, %v320_v27, %v324_v28 }
  0x1c   : > { %948 = vmatpush3.bf16.msra.mxu0 %v1015_v9 }
  0x1d   : > { %949 = vmatprep.subr.bf16.mxu0 %v1061_v1 }
  0x1e   : > { %928 = vmatpush3.bf16.msra.mxu1 %v1030_v18 }
  0x1f   : > { %929 = vmatprep.subr.bf16.mxu1 %v1061_v1 }
  0x20   : > { %950 = vmatpush3.bf16.msra.mxu0 %v1016_v11 }
  0x21   : > { %951 = vmatprep.subr.bf16.mxu0 %v1061_v1 }
  0x22   : > { %930 = vmatpush3.bf16.msra.mxu1 %v1032_v21 }
  0x23   : > { %931 = vmatprep.subr.bf16.mxu1 %v1061_v1 }
  0x24   : > { %952 = vmatpush3.bf16.msra.mxu0 %v1017_v16 }
  0x25   : > { %957 = vmatprep.subr.bf16.mxu0 %v1061_v1 }
  0x26   : > { %932 = vmatpush3.bf16.msra.mxu1 %v1034_v26 }
  0x27   : > { %954 = vmatmul.mubr.bf16.vlgmr.msra.gmra.mrb[0].mxu0 %v835_v15 }
  0x28   : > { %958 = vmatpush3.bf16.msra.mxu0 %v1021_v20  ;;  %973 = vmatprep.mubr.msk.bf16.mxu0 %vm1062_vm0, %v1061_v1 }
  0x29   : > { %959 = vmatprep.subr.bf16.mxu0 %v1061_v1  ;;  %934 = vmatmul.mubr.bf16.vlgmr.msra.gmra.mrb[0].mxu1 %v325_v30 }
  0x2c   : > { %960 = vmatpush3.bf16.msra.mxu0 %v1023_v25 }
  0x2d   : > { %961 = vmatprep.subr.bf16.mxu0 %v1061_v1 }
  0x30   : > { %962 = vmatpush3.bf16.msra.mxu0 %v1025_v29 }
  0x31   : > { %963 = vmatprep.subr.bf16.mxu0 %v1061_v1 }
  0x34   : > { %964 = vmatpush3.bf16.msra.mxu0 %v1027_v31 }
  0x35   : > { %965 = vmatprep.subr.bf16.mxu0 %v1061_v1 }
  0x38   : > { %966 = vmatpush3.bf16.msra.mxu0 %v1029_v32 }
  0x39   : > { %967 = vmatprep.subr.bf16.mxu0 %v1061_v1 }
  0x3c   : > { %968 = vmatpush3.bf16.msra.mxu0 %v1031_v33 }
  0x3d   : > { %969 = vmatprep.subr.bf16.mxu0 %v1061_v1 }
  0x40   : > { %970 = vmatpush3.bf16.msra.mxu0 %v1033_v36 }
  0x41   : > { %971 = vmatprep.subr.bf16.mxu0 %v1061_v1 }
  0x44   : > { %972 = vmatpush3.bf16.msra.mxu0 %v1036_v38 }
  0x47   : > { %974 = vmatmul.mubr.bf16.vlgmr.msra.gmra.mrb[0].mxu0 %v530_v40 }
  0xfc   : > { %v409_v41 = vpop.f32.mrb[0].mxu1 }
  0xfd   : > { %v935_v42 = vpop.f32.mrb[1].mxu1 }
  0xfe   : > { %v412_v43 = vpop.f32.mrb[2].mxu1 }
  0xff   : > { %v936_v44 = vpop.f32.mrb[3].mxu1 }
 0x11a   : > { %v614_v45 = vpop.f32.mrb[0].mxu0 }
 0x11b   : > { %v977_v46 = vadd.f32 %v614_v45, %v409_v41  ;;  %v975_v47 = vpop.f32.mrb[1].mxu0 }
 0x11c   : > { %v617_v48 = vpop.f32.mrb[2].mxu0 }
 0x11d   : > { %v978_v49 = vadd.f32 %v617_v48, %v412_v43  ;;  %v976_v50 = vpop.f32.mrb[3].mxu0  ;;  %v631_v51 = vmul.f32 %v977_v46, %v977_v46 }
 0x11f   : > { %v623_v52 = vadd.f32 %v978_v49, %v977_v46  ;;  %v632_v53 = vmul.f32 %v978_v49, %v978_v49  ;;  %v888_v54 = vpack.c.bf16 %v978_v49, %v977_v46 }
 0x121   : > { %v624_v55 = vrot.slane %v623_v52, 4  ;;  %v633_v56 = vadd.f32 %v632_v53, %v631_v51  ;;  %889 = vst [vmem:[%s254_s30] sm:$0xff] %v888_v54  }
 0x123   : > { %v625_v57 = vadd.f32 %v624_v55, %v623_v52  ;;  %v634_v58 = vrot.slane %v633_v56, 4 }
 0x125   : > { %v626_v59 = vrot.slane %v625_v57, 2  ;;  %v635_v60 = vadd.f32 %v634_v58, %v633_v56 }
 0x127   : > { %v627_v61 = vadd.f32 %v626_v59, %v625_v57  ;;  %v636_v62 = vrot.slane %v635_v60, 2 }
 0x129   : > { %v628_v63 = vrot.slane %v627_v61, 1  ;;  %v637_v0 = vadd.f32 %v636_v62, %v635_v60 }
 0x12b   : > { %v629_v1 = vadd.f32 %v628_v63, %v627_v61  ;;  %v638_v2 = vrot.slane %v637_v0, 1 }
 0x12d   : > { %630 = vst [vmem:[%s261_s7] sm:$0x1] %v629_v1  ;;  %v639_v3 = vadd.f32 %v638_v2, %v637_v0 }
 0x12f   : > { %640 = vst [vmem:[%s267_s10] sm:$0x1] %v639_v3 }
 0x130 PF: > { %s15_s17 = sadd.s32 1, %s1059_s17   ;;  %s1246_s15 = smov %s1055_s16 }
 0x131   : > { %p12_p5 = scmp.ge.s32.totalorder %s15_s17, 4   ;;  %s1247_s16 = smov %s1249_s18 }
 0x133   :  { %14 = sbr.rel (!%p12_p5) target bundleno = 2 (0x2), region = 84 }

</bundles_post_ra>
